<compile_context>
chip_gen: v5e
topology: v5e:2x2
jax: 0.10.0
libtpu: 0.0.40
codegen_flags: <defaults>
</compile_context>

<pallas_src>
import functools

import jax
import jax.numpy as jnp
from jax import lax
from jax.experimental import pallas as pl
from jax.experimental.pallas import tpu as pltpu


def physics_step_kernel(sigma_ref, eps_ref, agent_ref, state_ref, state_t_ref,
                        out_ref, *, dt, tj):
    # sigma_ref, eps_ref : SMEM (1,) f32 scalars (nn.Parameters)
    # agent_ref          : VMEM block (Bt, 1, 2)  per-batch external accel
    # state_ref          : VMEM block (Bt, N, 4)  original layout, N on sublanes ("j")
    # state_t_ref        : VMEM block (Bt, 4, N)  transposed,     N on lanes    ("i")
    # out_ref            : VMEM block (Bt, 4, N)  lane-dense output
    sigma = sigma_ref[0]
    eps = eps_ref[0]

    st = state_t_ref[...]                        # (Bt, 4, N)
    px_i = st[:, 0, :]                           # (Bt, N) lane-major
    py_i = st[:, 1, :]
    vx_i = st[:, 2, :]
    vy_i = st[:, 3, :]

    bt, _, n = st.shape
    n_chunks = n // tj

    sigma2 = sigma * sigma
    coef = 24.0 * eps

    def chunk_body(c, carry):
        fx_acc, fy_acc = carry
        j0 = pl.multiple_of(c * tj, tj)
        # Per-chunk load straight from the VMEM ref (N on sublanes).
        src = state_ref[:, pl.ds(j0, tj), :]     # (Bt, tj, 4)
        px_j = src[:, :, 0]                      # (Bt, tj)
        py_j = src[:, :, 1]

        # Pairwise displacement acting ON particle i FROM particle j: [b, j, i].
        dx = px_i[:, None, :] - px_j[:, :, None]     # (Bt, tj, N)
        dy = py_i[:, None, :] - py_j[:, :, None]

        # Floor keeps r2 strictly positive off-diagonal (same guard as ref);
        # the diagonal is discarded by the select on fmag below.
        r2 = jnp.maximum(dx * dx + dy * dy, 1e-6)
        inv_r2 = pl.reciprocal(r2, approx=False)     # single EUP divide, reused

        sr2 = sigma2 * inv_r2
        sr6 = sr2 * sr2 * sr2
        # Lennard-Jones force magnitude / r  (so f_vec = fmag * (dx, dy))
        fmag = coef * (2.0 * (sr6 * sr6) - sr6) * inv_r2

        # Self-interaction mask: small (tj, N) iotas, broadcast over Bt.
        jrow = lax.broadcasted_iota(jnp.int32, (tj, n), 0) + j0
        icol = lax.broadcasted_iota(jnp.int32, (tj, n), 1)
        fmag = jnp.where((jrow == icol)[None], 0.0, fmag)   # select, not multiply

        # Reduce over j (sublane axis) -> lane-major per-particle forces (Bt, N).
        fx_acc = fx_acc + jnp.sum(fmag * dx, axis=1)
        fy_acc = fy_acc + jnp.sum(fmag * dy, axis=1)
        return fx_acc, fy_acc

    zeros = jnp.zeros((bt, n), jnp.float32)
    fx, fy = lax.fori_loop(0, n_chunks, chunk_body, (zeros, zeros),
                           unroll=True if n_chunks <= 8 else 8)

    agent = agent_ref[...]                       # (Bt, 1, 2)
    ax = agent[:, :, 0]                          # (Bt, 1) broadcasts over N lanes
    ay = agent[:, :, 1]

    new_vx = vx_i + dt * (fx + ax)
    new_vy = vy_i + dt * (fy + ay)
    new_px = px_i + dt * new_vx
    new_py = py_i + dt * new_vy

    # Four direct channel-row stores, no concat temporary.
    out_ref[:, 0:1, :] = new_px[:, None, :]
    out_ref[:, 1:2, :] = new_py[:, None, :]
    out_ref[:, 2:3, :] = new_vx[:, None, :]
    out_ref[:, 3:4, :] = new_vy[:, None, :]


def _pick_block_b(B, N, cap=16):
    """Largest divisor of B that fits a conservative VMEM budget and (when
    possible) leaves >= 4 grid steps (>= 2 per TensorCore on v7x megacore)."""
    if B <= 1:
        return 1
    # Double-buffered I/O bytes per batch row: state(4N) + state_t(4N) + out(4N)
    # + agent(2), f32, x2 pipeline buffers.
    per_batch_bytes = (12 * N + 2) * 4 * 2
    vmem_budget = 8 << 20          # fits v5e's 16 MiB scoped-VMEM default
    cap = max(1, min(cap, vmem_budget // per_batch_bytes))
    divisors = [d for d in range(1, B + 1) if B % d == 0 and d <= cap]
    for min_steps in (4, 2, 1):
        ok = [d for d in divisors if B // d >= min_steps]
        if ok:
            return max(ok)
    return 1


def _pick_tj(N, Bt):
    """j-chunk size: keep ~6 live (Bt, TJ, N) f32 temporaries near vreg scale."""
    if N <= 32:
        return N
    budget = 2 << 20               # ~2 MiB of in-flight chunk temporaries
    for tj in range(min(32, N), 0, -1):
        if N % tj == 0 and 24 * Bt * tj * N <= budget:
            return tj
    return N  # TODO(synk): ragged chunking for awkward N; falls back to untiled.


class PhysicsSingleStepModel:
    """JAX/Pallas port of hts.learning.models.PhysicsSingleStepModel."""

    def __init__(self, epsilon=2, sigma=25, **kwparams):
        self.params = kwparams
        self.epsilon = jnp.asarray([float(epsilon)], dtype=jnp.float32)
        self.sigma = jnp.asarray([float(sigma)], dtype=jnp.float32)
        self.dt = float(kwparams.get("dt", 0.1))

    def __call__(self, agent, last_state):
        B, N, S = last_state.shape
        assert S == 4, "state layout is (px, py, vx, vy)"
        last_state = last_state.astype(jnp.float32)
        agent3 = agent.reshape(B, 1, 2).astype(jnp.float32)

        # Lane-major ("i") view; the sublane-major ("j") view is last_state itself.
        state_t = jnp.transpose(last_state, (0, 2, 1))   # [B, 4, N]

        Bt = _pick_block_b(B, N)
        TJ = _pick_tj(N, Bt)
        grid = (B // Bt,)

        kernel = functools.partial(physics_step_kernel, dt=self.dt, tj=TJ)
        cost = pl.CostEstimate(
            flops=int(20 * B * N * N + 12 * B * N),
            transcendentals=int(B * N * N),
            bytes_accessed=int(4 * (B * N * 4 + 2 * B * 4 * N + B * 2)),
        )

        out_t = pl.pallas_call(
            kernel,
            out_shape=jax.ShapeDtypeStruct((B, 4, N), jnp.float32),
            grid=grid,
            in_specs=[
                pl.BlockSpec(memory_space=pltpu.MemorySpace.SMEM),   # sigma
                pl.BlockSpec(memory_space=pltpu.MemorySpace.SMEM),   # epsilon
                pl.BlockSpec((Bt, 1, 2), lambda b: (b, 0, 0)),       # agent
                pl.BlockSpec((Bt, N, 4), lambda b: (b, 0, 0)),       # last_state (j)
                pl.BlockSpec((Bt, 4, N), lambda b: (b, 0, 0)),       # state_t (i)
            ],
            out_specs=pl.BlockSpec((Bt, 4, N), lambda b: (b, 0, 0)),
            compiler_params=pltpu.CompilerParams(
                dimension_semantics=("parallel",),
                vmem_limit_bytes=32 * 1024 * 1024,
            ),
            cost_estimate=cost,
        )(self.sigma, self.epsilon, agent3, last_state, state_t)

        # Back to channels-last [B, N, 4]; cheap XLA transpose outside the kernel.
        return jnp.transpose(out_t, (0, 2, 1))


def _reference(agent, last_state, sigma, eps, dt):
    """Pure-JAX reference for sanity checking."""
    px, py = last_state[..., 0], last_state[..., 1]
    vx, vy = last_state[..., 2], last_state[..., 3]
    dx = px[:, :, None] - px[:, None, :]
    dy = py[:, :, None] - py[:, None, :]
    n = px.shape[1]
    mask = jnp.eye(n, dtype=bool)[None]
    r2 = dx * dx + dy * dy
    r2s = jnp.where(mask, 1.0, jnp.maximum(r2, 1e-6))
    sr2 = (sigma * sigma) / r2s
    sr6 = sr2 ** 3
    fmag = jnp.where(mask, 0.0, 24.0 * eps * (2.0 * sr6 * sr6 - sr6) / r2s)
    fx = jnp.sum(fmag * dx, axis=2) + agent[:, 0:1]
    fy = jnp.sum(fmag * dy, axis=2) + agent[:, 1:2]
    nvx, nvy = vx + dt * fx, vy + dt * fy
    npx, npy = px + dt * nvx, py + dt * nvy
    return jnp.stack([npx, npy, nvx, nvy], axis=-1)


if __name__ == "__main__":
    key = jax.random.PRNGKey(0)
    k1, k2, k3 = jax.random.split(key, 3)

    B, N = 8, 16
    pos = jax.random.uniform(k1, (B, N, 2), jnp.float32, 0.0, 100.0)
    vel = jax.random.normal(k2, (B, N, 2), jnp.float32)
    last_state = jnp.concatenate([pos, vel], axis=-1)           # [B, N, 4]
    agent = jax.random.normal(k3, (B, 2), jnp.float32)          # [B, 2]

    model = PhysicsSingleStepModel(epsilon=2, sigma=25, dt=0.1)
    out = model(agent, last_state)
    out = jax.block_until_ready(out)

    ref = _reference(agent, last_state, 25.0, 2.0, 0.1)
    assert out.shape == (B, N, 4) and out.dtype == jnp.float32
    assert jnp.allclose(out, ref, rtol=1e-4, atol=1e-3), "mismatch vs reference"

    print("KERNEL_OK")
</pallas_src>

<mosaic_0001>
module attributes {stable_mosaic.version = 11 : i64} {
  func.func @physics_step_kernel(%arg0: i32, %arg1: memref<1xf32, #tpu.memory_space<smem>>, %arg2: memref<1xf32, #tpu.memory_space<smem>>, %arg3: memref<2x1x2xf32, #tpu.memory_space<vmem>>, %arg4: memref<2x16x4xf32, #tpu.memory_space<vmem>>, %arg5: memref<2x4x16xf32, #tpu.memory_space<vmem>>, %arg6: memref<2x4x16xf32, #tpu.memory_space<vmem>>) attributes {dimension_semantics = [#tpu.dimension_semantics<parallel>], iteration_bounds = array<i64: 4>, scalar_prefetch = 0 : i64, scratch_operands = 0 : i64, tpu.core_type = #tpu.core_type<tc>, window_params = [{transform_indices = @transform_0, window_bounds = array<i64: 1>}, {transform_indices = @transform_1, window_bounds = array<i64: 1>}, {transform_indices = @transform_2, window_bounds = array<i64: 2, 1, 2>}, {transform_indices = @transform_3, window_bounds = array<i64: 2, 16, 4>}, {transform_indices = @transform_4, window_bounds = array<i64: 2, 4, 16>}, {transform_indices = @transform_5, window_bounds = array<i64: 2, 4, 16>}]} {
    %c0 = arith.constant 0 : index
    %0 = memref.load %arg1[%c0] : memref<1xf32, #tpu.memory_space<smem>>
    %c0_0 = arith.constant 0 : index
    %1 = memref.load %arg2[%c0_0] : memref<1xf32, #tpu.memory_space<smem>>
    %c0_1 = arith.constant 0 : index
    %c0_2 = arith.constant 0 : index
    %c0_3 = arith.constant 0 : index
    %2 = vector.load %arg5[%c0_1, %c0_2, %c0_3] : memref<2x4x16xf32, #tpu.memory_space<vmem>>, vector<2x4x16xf32>
    %3 = vector.extract_strided_slice %2 {offsets = [0, 0, 0], sizes = [2, 1, 16], strides = [1, 1, 1]} : vector<2x4x16xf32> to vector<2x1x16xf32>
    %4 = vector.shape_cast %3 : vector<2x1x16xf32> to vector<2x16xf32>
    %5 = vector.extract_strided_slice %2 {offsets = [0, 1, 0], sizes = [2, 1, 16], strides = [1, 1, 1]} : vector<2x4x16xf32> to vector<2x1x16xf32>
    %6 = vector.shape_cast %5 : vector<2x1x16xf32> to vector<2x16xf32>
    %7 = vector.extract_strided_slice %2 {offsets = [0, 2, 0], sizes = [2, 1, 16], strides = [1, 1, 1]} : vector<2x4x16xf32> to vector<2x1x16xf32>
    %8 = vector.shape_cast %7 : vector<2x1x16xf32> to vector<2x16xf32>
    %9 = vector.extract_strided_slice %2 {offsets = [0, 3, 0], sizes = [2, 1, 16], strides = [1, 1, 1]} : vector<2x4x16xf32> to vector<2x1x16xf32>
    %10 = vector.shape_cast %9 : vector<2x1x16xf32> to vector<2x16xf32>
    %11 = arith.mulf %0, %0 : f32
    %cst = arith.constant 2.400000e+01 : f32
    %12 = arith.mulf %cst, %1 : f32
    %cst_4 = arith.constant 0.000000e+00 : f32
    %13 = vector.broadcast %cst_4 : f32 to vector<2x16xf32>
    %c0_i32 = arith.constant 0 : i32
    %c16_i32 = arith.constant 16 : i32
    %14 = arith.muli %c0_i32, %c16_i32 : i32
    %15 = tpu.assume_multiple %14, 16 : i32
    %c0_5 = arith.constant 0 : index
    %16 = arith.index_cast %15 : i32 to index
    %c0_6 = arith.constant 0 : index
    %17 = vector.load %arg4[%c0_5, %16, %c0_6] : memref<2x16x4xf32, #tpu.memory_space<vmem>>, vector<2x16x4xf32>
    %18 = vector.extract_strided_slice %17 {offsets = [0, 0, 0], sizes = [2, 16, 1], strides = [1, 1, 1]} : vector<2x16x4xf32> to vector<2x16x1xf32>
    %19 = vector.shape_cast %18 : vector<2x16x1xf32> to vector<2x16xf32>
    %20 = vector.extract_strided_slice %17 {offsets = [0, 0, 1], sizes = [2, 16, 1], strides = [1, 1, 1]} : vector<2x16x4xf32> to vector<2x16x1xf32>
    %21 = vector.shape_cast %20 : vector<2x16x1xf32> to vector<2x16xf32>
    %22 = vector.shape_cast %4 : vector<2x16xf32> to vector<2x1x16xf32>
    %23 = vector.shape_cast %19 : vector<2x16xf32> to vector<2x16x1xf32>
    %24 = vector.broadcast %22 : vector<2x1x16xf32> to vector<2x16x16xf32>
    %25 = vector.broadcast %23 : vector<2x16x1xf32> to vector<2x16x16xf32>
    %26 = arith.subf %24, %25 : vector<2x16x16xf32>
    %27 = vector.shape_cast %6 : vector<2x16xf32> to vector<2x1x16xf32>
    %28 = vector.shape_cast %21 : vector<2x16xf32> to vector<2x16x1xf32>
    %29 = vector.broadcast %27 : vector<2x1x16xf32> to vector<2x16x16xf32>
    %30 = vector.broadcast %28 : vector<2x16x1xf32> to vector<2x16x16xf32>
    %31 = arith.subf %29, %30 : vector<2x16x16xf32>
    %32 = arith.mulf %26, %26 : vector<2x16x16xf32>
    %33 = arith.mulf %31, %31 : vector<2x16x16xf32>
    %34 = arith.addf %32, %33 : vector<2x16x16xf32>
    %cst_7 = arith.constant 9.99999997E-7 : f32
    %35 = vector.broadcast %cst_7 : f32 to vector<2x16x16xf32>
    %36 = arith.maximumf %34, %35 : vector<2x16x16xf32>
    %37 = tpu.reciprocal %36 : vector<2x16x16xf32> -> vector<2x16x16xf32>
    %38 = vector.broadcast %11 : f32 to vector<2x16x16xf32>
    %39 = arith.mulf %38, %37 : vector<2x16x16xf32>
    %40 = arith.mulf %39, %39 : vector<2x16x16xf32>
    %41 = arith.mulf %40, %39 : vector<2x16x16xf32>
    %42 = arith.mulf %41, %41 : vector<2x16x16xf32>
    %cst_8 = arith.constant 2.000000e+00 : f32
    %43 = vector.broadcast %cst_8 : f32 to vector<2x16x16xf32>
    %44 = arith.mulf %43, %42 : vector<2x16x16xf32>
    %45 = arith.subf %44, %41 : vector<2x16x16xf32>
    %46 = vector.broadcast %12 : f32 to vector<2x16x16xf32>
    %47 = arith.mulf %46, %45 : vector<2x16x16xf32>
    %48 = arith.mulf %47, %37 : vector<2x16x16xf32>
    %49 = tpu.iota {dimensions = array<i32: 0>} : vector<16x16xi32>
    %50 = vector.broadcast %15 : i32 to vector<16x16xi32>
    %51 = arith.addi %49, %50 : vector<16x16xi32>
    %52 = tpu.iota {dimensions = array<i32: 1>} : vector<16x16xi32>
    %53 = arith.cmpi eq, %51, %52 : vector<16x16xi32>
    %54 = vector.shape_cast %53 : vector<16x16xi1> to vector<1x16x16xi1>
    %cst_9 = arith.constant 0.000000e+00 : f32
    %55 = vector.shape_cast %54 : vector<1x16x16xi1> to vector<1x16x16xi1>
    %56 = vector.broadcast %55 : vector<1x16x16xi1> to vector<2x16x16xi1>
    %57 = vector.broadcast %cst_9 : f32 to vector<2x16x16xf32>
    %58 = arith.select %56, %57, %48 : vector<2x16x16xi1>, vector<2x16x16xf32>
    %59 = arith.mulf %58, %26 : vector<2x16x16xf32>
    %cst_10 = arith.constant dense<0.000000e+00> : vector<2x16xf32>
    %60 = vector.multi_reduction <add>, %59, %cst_10 [1] : vector<2x16x16xf32> to vector<2x16xf32>
    %61 = arith.addf %13, %60 : vector<2x16xf32>
    %62 = arith.mulf %58, %31 : vector<2x16x16xf32>
    %cst_11 = arith.constant dense<0.000000e+00> : vector<2x16xf32>
    %63 = vector.multi_reduction <add>, %62, %cst_11 [1] : vector<2x16x16xf32> to vector<2x16xf32>
    %64 = arith.addf %13, %63 : vector<2x16xf32>
    %c1_i32 = arith.constant 1 : i32
    %c0_12 = arith.constant 0 : index
    %c0_13 = arith.constant 0 : index
    %c0_14 = arith.constant 0 : index
    %65 = vector.load %arg3[%c0_12, %c0_13, %c0_14] : memref<2x1x2xf32, #tpu.memory_space<vmem>>, vector<2x1x2xf32>
    %66 = vector.extract_strided_slice %65 {offsets = [0, 0, 0], sizes = [2, 1, 1], strides = [1, 1, 1]} : vector<2x1x2xf32> to vector<2x1x1xf32>
    %67 = vector.shape_cast %66 : vector<2x1x1xf32> to vector<2x1xf32>
    %68 = vector.extract_strided_slice %65 {offsets = [0, 0, 1], sizes = [2, 1, 1], strides = [1, 1, 1]} : vector<2x1x2xf32> to vector<2x1x1xf32>
    %69 = vector.shape_cast %68 : vector<2x1x1xf32> to vector<2x1xf32>
    %70 = vector.broadcast %67 : vector<2x1xf32> to vector<2x16xf32>
    %71 = arith.addf %61, %70 : vector<2x16xf32>
    %cst_15 = arith.constant 1.000000e-01 : f32
    %72 = vector.broadcast %cst_15 : f32 to vector<2x16xf32>
    %73 = arith.mulf %72, %71 : vector<2x16xf32>
    %74 = arith.addf %8, %73 : vector<2x16xf32>
    %75 = vector.broadcast %69 : vector<2x1xf32> to vector<2x16xf32>
    %76 = arith.addf %64, %75 : vector<2x16xf32>
    %cst_16 = arith.constant 1.000000e-01 : f32
    %77 = vector.broadcast %cst_16 : f32 to vector<2x16xf32>
    %78 = arith.mulf %77, %76 : vector<2x16xf32>
    %79 = arith.addf %10, %78 : vector<2x16xf32>
    %cst_17 = arith.constant 1.000000e-01 : f32
    %80 = vector.broadcast %cst_17 : f32 to vector<2x16xf32>
    %81 = arith.mulf %80, %74 : vector<2x16xf32>
    %82 = arith.addf %4, %81 : vector<2x16xf32>
    %cst_18 = arith.constant 1.000000e-01 : f32
    %83 = vector.broadcast %cst_18 : f32 to vector<2x16xf32>
    %84 = arith.mulf %83, %79 : vector<2x16xf32>
    %85 = arith.addf %6, %84 : vector<2x16xf32>
    %86 = vector.shape_cast %82 : vector<2x16xf32> to vector<2x1x16xf32>
    %c0_19 = arith.constant 0 : index
    %c0_20 = arith.constant 0 : index
    %c0_21 = arith.constant 0 : index
    %87 = vector.load %arg6[%c0_19, %c0_20, %c0_21] : memref<2x4x16xf32, #tpu.memory_space<vmem>>, vector<2x1x16xf32>
    tpu.vector_store %arg6[%c0_19, %c0_20, %c0_21], %86 {strides = array<i32>} : memref<2x4x16xf32, #tpu.memory_space<vmem>>, vector<2x1x16xf32>,
    %88 = vector.shape_cast %85 : vector<2x16xf32> to vector<2x1x16xf32>
    %c0_22 = arith.constant 0 : index
    %c1 = arith.constant 1 : index
    %c0_23 = arith.constant 0 : index
    %89 = vector.load %arg6[%c0_22, %c1, %c0_23] : memref<2x4x16xf32, #tpu.memory_space<vmem>>, vector<2x1x16xf32>
    tpu.vector_store %arg6[%c0_22, %c1, %c0_23], %88 {strides = array<i32>} : memref<2x4x16xf32, #tpu.memory_space<vmem>>, vector<2x1x16xf32>,
    %90 = vector.shape_cast %74 : vector<2x16xf32> to vector<2x1x16xf32>
    %c0_24 = arith.constant 0 : index
    %c2 = arith.constant 2 : index
    %c0_25 = arith.constant 0 : index
    %91 = vector.load %arg6[%c0_24, %c2, %c0_25] : memref<2x4x16xf32, #tpu.memory_space<vmem>>, vector<2x1x16xf32>
    tpu.vector_store %arg6[%c0_24, %c2, %c0_25], %90 {strides = array<i32>} : memref<2x4x16xf32, #tpu.memory_space<vmem>>, vector<2x1x16xf32>,
    %92 = vector.shape_cast %79 : vector<2x16xf32> to vector<2x1x16xf32>
    %c0_26 = arith.constant 0 : index
    %c3 = arith.constant 3 : index
    %c0_27 = arith.constant 0 : index
    %93 = vector.load %arg6[%c0_26, %c3, %c0_27] : memref<2x4x16xf32, #tpu.memory_space<vmem>>, vector<2x1x16xf32>
    tpu.vector_store %arg6[%c0_26, %c3, %c0_27], %92 {strides = array<i32>} : memref<2x4x16xf32, #tpu.memory_space<vmem>>, vector<2x1x16xf32>,
    return
  }
  func.func @transform_0(%arg0: i32) -> i32 {
    %c0_i32 = arith.constant 0 : i32
    %c0_i32_0 = arith.constant 0 : i32
    return %c0_i32 : i32
  }
  func.func @transform_1(%arg0: i32) -> i32 {
    %c0_i32 = arith.constant 0 : i32
    %c0_i32_0 = arith.constant 0 : i32
    return %c0_i32 : i32
  }
  func.func @transform_2(%arg0: i32) -> (i32, i32, i32) {
    %c0_i32 = arith.constant 0 : i32
    %c0_i32_0 = arith.constant 0 : i32
    %c0_i32_1 = arith.constant 0 : i32
    return %arg0, %c0_i32, %c0_i32_0 : i32, i32, i32
  }
  func.func @transform_3(%arg0: i32) -> (i32, i32, i32) {
    %c0_i32 = arith.constant 0 : i32
    %c0_i32_0 = arith.constant 0 : i32
    %c0_i32_1 = arith.constant 0 : i32
    return %arg0, %c0_i32, %c0_i32_0 : i32, i32, i32
  }
  func.func @transform_4(%arg0: i32) -> (i32, i32, i32) {
    %c0_i32 = arith.constant 0 : i32
    %c0_i32_0 = arith.constant 0 : i32
    %c0_i32_1 = arith.constant 0 : i32
    return %arg0, %c0_i32, %c0_i32_0 : i32, i32, i32
  }
  func.func @transform_5(%arg0: i32) -> (i32, i32, i32) {
    %c0_i32 = arith.constant 0 : i32
    %c0_i32_0 = arith.constant 0 : i32
    %c0_i32_1 = arith.constant 0 : i32
    return %arg0, %c0_i32, %c0_i32_0 : i32, i32, i32
  }
}

</mosaic_0001>

<bundles_post_ra>
// kernel: tpu_custom_call.1
= control target key start
LH: loop header
LB: loop body
LE: loop exit
PB: predicated region body
PF: predicated region fallthrough
CT: control target
= control target key end

     0   :  { %s1078_s0 = inlined_call_operand.<no memory space> [shape: f32[1], index: 0, kind: input, shape index: {}]   ;;  %s1079_s1 = inlined_call_operand.<no memory space> [shape: f32[1], index: 1, kind: input, shape index: {}]   ;;  %s1080_s2 = inlined_call_operand.vmem [shape: f32[8,1,2], index: 2, kind: input, shape index: {}]   ;;  %s1081_s3 = inlined_call_operand.vmem [shape: f32[8,16,4], index: 3, kind: input, shape index: {}]   ;;  %s1082_s4 = inlined_call_operand.vmem [shape: f32[8,4,16], index: 4, kind: input, shape index: {}]   ;;  %s1083_s5 = inlined_call_operand.hbm [shape: f32[8,4,16], index: 5, kind: output, shape index: {}]  }
   0x1   :  { %10 = sst [smem:[#allocation2]] %s1078_s0 }
   0x2   :  { %11 = sst [smem:[#allocation3]] %s1079_s1 }
   0x3   :  { %12 = vsyncpa [#allocation5], 0 }
   0x4   :  { %14 = vsyncpa [#allocation5 + $0x1], 0  ;;  %s863_s22 = smov 0   ;;  %s865_s23 = smov 0  }
   0x5   :  { %s867_s24 = smov 0   ;;  %s869_s25 = smov 0  }
   0x6 LB: > { %s884_s0 = sadd.s32 4294967295, %s821_s25   ;;  %s682_s1 = sadd.s32 4294967294, %s821_s25   ;;  %s821_s25 = sphi %s869_s25, %s1089_s25   ;;  %s817_s24 = sphi %s867_s24, %s1088_s24   ;;  %s813_s23 = sphi %s865_s23, %s1087_s23   ;;  %s809_s22 = sphi %s863_s22, %s1086_s22  }
   0x7   : > { %s888_s26 = sadd.s32 1, %s821_s25   ;;  %s147_s27 = sadd.s32 1, %s817_s24 }
   0x8   : > { %s144_s28 = ssub.s32 %s821_s25, %s888_s26  ;;  %p157_p0 = scmp.ne.s32.totalorder %s817_s24, %s813_s23 }
   0x9   : > { %p145_p1 = scmp.eq.s32.totalorder %s144_s28, 0  ;;  %p158_p2 = scmp.eq.s32.totalorder %s884_s0, 3 }
   0xa   : > { %p163_p3 = scmp.ne.s32.totalorder %s813_s23, %s809_s22  ;;  %p164_p4 = scmp.eq.s32.totalorder %s682_s1, 3 }
   0xb   : > { %s899_s29 = scalar_select %p145_p1, %s817_s24, %s147_s27  }
   0xc   : > { %p901_p5 = por %p158_p2, %p157_p0  ;;  %p905_p6 = por %p164_p4, %p163_p3 }
   0xd   : > { %p685_p7 = scmp.ge.s32.totalorder %s821_s25, 1  ;;  %p215_p8 = scmp.lt.s32.totalorder %s821_s25, 5 }
   0xf   : > { %p216_p9 = pnand %p685_p7, %p215_p8 }
  0x10   : > { %s687_s7 = sshll.u32 (!%p216_p9), %s884_s0, 1  ;;  %s272_s19 = sld [smem:[#allocation2]] (!%p216_p9) }
  0x11   : > { %219 = sbr.rel (%p216_p9) target bundleno = 238 (0xee), region = 40  ;;  %p254_p10 = scmp.lt.s32.totalorder (!%p216_p9), %s687_s7, 7 }
  0x12   : > { %s966_s21 = sld [smem:[#allocation3]] (!%p216_p9)  ;;  %s250_s27 = sand.u32 (!%p216_p9), 1, %s813_s23  }
  0x13   : > { %s686_s28 = sshll.u32 (!%p216_p9), %s250_s27, 3  ;;  %s584_s13 = scalar_lea.sflag (!%p216_p9), [#allocation5], %s250_s27 }
  0x16   : > { %v823_v0 = vmov 0   ;;  %v824_v1 = vmov 1   ;;  %s1091_s7 = smov (!%p254_p10, %s687_s7), 7  ;;  %s276_s20 = smul.f32 %s272_s19, %s272_s19 }
  0x17   : > { %744 = vset.pattern.permute.xlu1 %v823_v0  ;;  %743 = vset.pattern.permute.xlu0 %v823_v0  ;;  %s698_s8 = sshll.u32 %s1091_s7, 4  ;;  %s256_s14 = scalar_lea.vmem %s1080_s2, %s1091_s7 }
  0x18   : > { %745 = vset.pattern.permute.xlu2 %v824_v1  ;;  %s263_s11 = scalar_lea.vmem %s1081_s3, %s698_s8  ;;  %v503_v6 = vld [vmem:[%s256_s14] sm:$0x1]  ;;  %v504_v7 = vld [vmem:[%s256_s14 + $0x1] sm:$0x1]  ;;  %s692_s15 = sshll.u32 %s1091_s7, 2  ;;  %v968_v49 = vstv %s276_s20 }
  0x19   : > { %v280_v2 = vld [vmem:[%s263_s11 + $0x10] sm:$0xff]  ;;  %v278_v3 = vld [vmem:[%s263_s11] sm:$0xff]  ;;  %v281_v4 = vld [vmem:[%s263_s11 + $0x18] sm:$0xff]  ;;  %s269_s18 = scalar_lea.vmem %s1082_s4, %s692_s15  ;;  %s277_s1 = smul.f32 24.0, %s966_s21 }
  0x1a   : > { %296 = vperm.xlu1 %744, %v280_v2   ;;  %286 = vperm.xlu0 %743, %v278_v3   ;;  %v279_v5 = vld [vmem:[%s263_s11 + $0x8] sm:$0xff]  ;;  %v926_v8 = vld [vmem:[%s269_s18] sm:$0xf]  ;;  %v940_v24 = vld [vmem:[%s269_s18 + $0x4] sm:$0xf]  ;;  %s1020_s7 = scalar_lea.vmem [#allocation4], %s686_s28 }
  0x1b   : > { %311 = vperm.xlu2 %745, %v278_v3   ;;  %v308_v9 = vperm.slane %v926_v8, 1  ;;  %v282_v12 = vperm.slane %v926_v8, 0  ;;  %v283_v28 = vperm.slane %v940_v24, 0  ;;  %v309_v31 = vperm.slane %v940_v24, 1  ;;  %s699_s8 = sshll.u32 %s884_s0, 3  ;;  %s596_s0 = sshll.u32 %s1020_s7, 4  ;;  %s597_s0 = int_to_ptr.vmem [resolvable:$true] %s596_s0 }
  0x1c   : > { %s595_s11 = scalar_lea.hbm %s1083_s5, %s699_s8  ;;  %s779_s18 = scalar_lea.hbm %s1083_s5, 32 }
  0x1d   : > { %s598_s12 = sshll.u32 %s595_s11, 4  ;;  %s599_s12 = int_to_ptr.hbm [resolvable:$true] %s598_s12 }
  0x1e   : > { %s773_s14 = sshra.s32 %s599_s12, 4  ;;  %s774_s14 = int_to_ptr.hbm [resolvable:$true] %s773_s14 }
  0x1f   : > { %s775_s15 = scalar_lea.hbm %s774_s14, 8  ;;  %p780_p0 = scmp.lt.s32.totalorder %s774_s14, %s1083_s5 }
  0x20   : > { %p776_p11 = scmp.ne.s32.totalorder %s774_s14, %s775_s15  ;;  %p781_p1 = scmp.lt.s32.totalorder %s779_s18, %s775_s15 }
  0x22   : > { %301 = vperm.xlu1 %744, %v281_v4   ;;  %291 = vperm.xlu0 %743, %v279_v5   ;;  %p777_p12 = pnand %p776_p11, %p901_p5  ;;  %p782_p2 = por %p781_p1, %p780_p0 }
  0x23   : > { %315 = vperm.xlu2 %745, %v279_v5  }
  0x24   : > { %p778_p13 = pneg %p777_p12 }
  0x26   : > { %p783_p3 = pnand %p782_p2, %p778_p13 }
  0x2a   : > { %747 = vset.pattern.permute.xlu1 %v824_v1  ;;  %746 = vset.pattern.permute.xlu0 %v824_v1 }
  0x2b   : > { %323 = vperm.xlu1 %747, %v281_v4   ;;  %319 = vperm.xlu0 %746, %v280_v2  }
  0x2c   : > { %748 = vset.pattern.permute.xlu2 %v823_v0 }
  0x2d   : > { %507 = vperm.xlu2 %748, %v503_v6  }
  0x33   : > { %535 = vperm.xlu0 %746, %v504_v7   ;;  %749 = vset.pattern.permute.xlu1 %v823_v0 }
  0x34   : > { %513 = vperm.xlu1 %749, %v504_v7  }
  0x35   : > { %750 = vset.pattern.permute.xlu2 %v824_v1 }
  0x36   : > { %530 = vperm.xlu2 %750, %v503_v6   ;;  %v436_v6 = vlaneseq }
  0x75   : > { %v312_v10 = vpop.permute.xlu2 %311 }
  0x76   : > { %v929_v11 = vsub.f32 %v308_v9, %v312_v10 }
  0x78   : > { %v334_v15 = vmul.f32 %v929_v11, %v929_v11 }
  0x7d   : > { %v316_v18 = vpop.permute.xlu2 %315 }
  0x7e   : > { %v938_v20 = vsub.f32 %v308_v9, %v316_v18 }
  0x80   : > { %v335_v25 = vmul.f32 %v938_v20, %v938_v20 }
  0x8c   : > { %v297_v13 = vpop.permute.xlu1 %296  ;;  %v287_v14 = vpop.permute.xlu0 %286 }
  0x8d   : > { %v934_v16 = vsub.f32 %v282_v12, %v287_v14  ;;  %v950_v34 = vsub.f32 %v283_v28, %v297_v13  ;;  %v972_v14 = vstv %s277_s1 }
  0x8f   : > { %v330_v17 = vmul.f32 %v934_v16, %v934_v16  ;;  %v332_v44 = vmul.f32 %v950_v34, %v950_v34 }
  0x91   : > { %v338_v19 = vadd.f32 %v334_v15, %v330_v17 }
  0x93   : > { %v342_v21 = vmax.f32 %v338_v19, 1e-06 }
  0x94   : > { %v302_v22 = vpop.permute.xlu1 %301  ;;  %v292_v23 = vpop.permute.xlu0 %291 }
  0x95   : > { %751 = vrcp.f32 %v342_v21  ;;  %v944_v26 = vsub.f32 %v282_v12, %v292_v23  ;;  %v952_v35 = vsub.f32 %v283_v28, %v302_v22  ;;  %v357_v39 = vand.u32 2147483648, %v342_v21 }
  0x96   : > { %v355_v43 = vand.u32 2147483647, %v342_v21  ;;  %vm351_vm1 = vweird.f32 %v342_v21 }
  0x97   : > { %v331_v27 = vmul.f32 %v944_v26, %v944_v26  ;;  %v333_v45 = vmul.f32 %v952_v35, %v952_v35  ;;  %v358_v50 = vor.u32 1.1754944e-38, %v357_v39 }
  0x98   : > { %vm356_vm3 = vcmp.eq.f32.partialorder %v355_v43, 8.507059e+37 }
  0x99   : > { %v339_v29 = vadd.f32 %v335_v25, %v331_v27 }
  0x9b   : > { %v752_v30 = vpop.eup %751  ;;  %v343_v33 = vmax.f32 %v339_v29, 1e-06 }
  0x9c   : > { %v347_v32 = vmul.f32 %v752_v30, %v342_v21  ;;  %vm352_vm0 = vweird.f32 %v752_v30  ;;  %v975_v21 = vshrl.u32 %v436_v6, 7 }
  0x9d   : > { %v324_v36 = vpop.permute.xlu1 %323  ;;  %v320_v37 = vpop.permute.xlu0 %319  ;;  %753 = vrcp.f32 %v343_v33  ;;  %vm353_vm2 = vmor %vm351_vm1, %vm352_vm0  ;;  %v371_v62 = vand.u32 2147483648, %v343_v33  ;;  %v369_v0 = vand.u32 2147483647, %v343_v33  ;;  %vm365_vm5 = vweird.f32 %v343_v33 }
  0x9e   : > { %v348_v38 = vsub.f32 1.0, %v347_v32  ;;  %v954_v40 = vsub.f32 %v309_v31, %v324_v36  ;;  %v956_v41 = vsub.f32 %v309_v31, %v320_v37 }
  0x9f   : > { %v372_v4 = vor.u32 1.1754944e-38, %v371_v62  ;;  %vm370_vm7 = vcmp.eq.f32.partialorder %v369_v0, 8.507059e+37 }
  0xa0   : > { %v349_v42 = vmul.f32 %v752_v30, %v348_v38  ;;  %v337_v46 = vmul.f32 %v954_v40, %v954_v40  ;;  %v336_v47 = vmul.f32 %v956_v41, %v956_v41 }
  0xa2   : > { %v350_v48 = vadd.f32 %v752_v30, %v349_v42  ;;  %v341_v51 = vadd.f32 %v337_v46, %v333_v45  ;;  %v340_v52 = vadd.f32 %v336_v47, %v332_v44 }
  0xa3   : > { %v754_v53 = vpop.eup %753 }
  0xa4   : > { %v354_v54 = vsel %vm353_vm2, %v752_v30, %v350_v48  ;;  %v361_v56 = vmul.f32 %v754_v53, %v343_v33  ;;  %v345_v57 = vmax.f32 %v341_v51, 1e-06  ;;  %v344_v59 = vmax.f32 %v340_v52, 1e-06 }
  0xa5   : > { %v359_v55 = vsel %vm356_vm3, %v358_v50, %v354_v54  ;;  %vm366_vm4 = vweird.f32 %v754_v53  ;;  %v978_v30 = vand.u32 127, %v436_v6  ;;  %v438_v48 = vadd.s32 8, %v975_v21 }
  0xa6   : > { %v403_v58 = vmul.f32 %v968_v49, %v359_v55  ;;  %v362_v60 = vsub.f32 1.0, %v361_v56  ;;  %755 = vrcp.f32 %v345_v57  ;;  %vm367_vm6 = vmor %vm365_vm5, %vm366_vm4  ;;  %v399_v23 = vand.u32 2147483648, %v345_v57 }
  0xa7   : > { %757 = vrcp.f32 %v344_v59  ;;  %v397_v29 = vand.u32 2147483647, %v345_v57  ;;  %v385_v33 = vand.u32 2147483648, %v344_v59  ;;  %vm393_vm9 = vweird.f32 %v345_v57 }
  0xa8   : > { %v407_v61 = vmul.f32 %v403_v58, %v403_v58  ;;  %v363_v63 = vmul.f32 %v754_v53, %v362_v60  ;;  %v383_v37 = vand.u32 2147483647, %v344_v59  ;;  %v400_v39 = vor.u32 1.1754944e-38, %v399_v23 }
  0xa9   : > { %vm398_vm12 = vcmp.eq.f32.partialorder %v397_v29, 8.507059e+37  ;;  %vm379_vm13 = vweird.f32 %v344_v59  ;;  %vm444_vm14 = vcmp.eq.s32.totalorder %v975_v21, %v978_v30  ;;  %v386_v47 = vor.u32 1.1754944e-38, %v385_v33 }
  0xaa   : > { %v411_v1 = vmul.f32 %v407_v61, %v403_v58  ;;  %v364_v2 = vadd.f32 %v754_v53, %v363_v63  ;;  %vm384_vm0 = vcmp.eq.f32.partialorder %v383_v37, 8.507059e+37  ;;  %vm445_vm1 = vcmp.eq.s32.totalorder %v438_v48, %v978_v30 }
  0xab   : > { %vm458_vm2 = vcmask 130048   ;;  %vm580_vm3 = vcmask 125955   ;;  %vm577_vm4 = vcmask 124930   ;;  %vm574_vm5 = vcmask 123905  }
  0xac   : > { %v415_v3 = vmul.f32 %v411_v1, %v411_v1  ;;  %v756_v5 = vpop.eup %755  ;;  %v368_v7 = vsel %vm367_vm6, %v754_v53, %v364_v2  ;;  %vm571_vm6 = vcmask 122880  }
  0xad   : > { %v758_v9 = vpop.eup %757  ;;  %v373_v12 = vsel %vm370_vm7, %v372_v4, %v368_v7  ;;  %v389_v13 = vmul.f32 %v756_v5, %v345_v57  ;;  %vm394_vm8 = vweird.f32 %v756_v5 }
  0xae   : > { %v419_v10 = vmul.f32 2.0, %v415_v3  ;;  %v404_v15 = vmul.f32 %v968_v49, %v373_v12  ;;  %v375_v17 = vmul.f32 %v758_v9, %v344_v59  ;;  %vm380_vm10 = vweird.f32 %v758_v9  ;;  %vm395_vm11 = vmor %vm393_vm9, %vm394_vm8 }
  0xaf   : > { %v390_v19 = vsub.f32 1.0, %v389_v13  ;;  %vm381_vm15 = vmor %vm379_vm13, %vm380_vm10 }
  0xb0   : > { %v423_v18 = vsub.f32 %v419_v10, %v411_v1  ;;  %v408_v22 = vmul.f32 %v404_v15, %v404_v15  ;;  %v376_v25 = vsub.f32 1.0, %v375_v17 }
  0xb1   : > { %v391_v28 = vmul.f32 %v756_v5, %v390_v19 }
  0xb2   : > { %v428_v27 = vmul.f32 %v972_v14, %v423_v18  ;;  %v412_v31 = vmul.f32 %v408_v22, %v404_v15  ;;  %v377_v32 = vmul.f32 %v758_v9, %v376_v25 }
  0xb3   : > { %v392_v36 = vadd.f32 %v756_v5, %v391_v28 }
  0xb4   : > { %v416_v38 = vmul.f32 %v412_v31, %v412_v31  ;;  %v378_v42 = vadd.f32 %v758_v9, %v377_v32  ;;  %v432_v43 = vmul.f32 %v428_v27, %v359_v55 }
  0xb5   : > { %v396_v44 = vsel %vm395_vm11, %v756_v5, %v392_v36  ;;  %v508_v5 = vpop.permute.xlu2 %507 }
  0xb6   : > { %v420_v45 = vmul.f32 2.0, %v416_v38  ;;  %v401_v46 = vsel %vm398_vm12, %v400_v39, %v396_v44  ;;  %v382_v51 = vsel %vm381_vm15, %v758_v9, %v378_v42  ;;  %v450_v54 = vsel %vm444_vm14, 0.0, %v432_v43 }
  0xb7   : > { %v406_v50 = vmul.f32 %v968_v49, %v401_v46  ;;  %v387_v53 = vsel %vm384_vm0, %v386_v47, %v382_v51  ;;  %v454_v60 = vmul.f32 %v450_v54, %v934_v16  ;;  %v479_v61 = vmul.f32 %v450_v54, %v929_v11 }
  0xb8   : > { %v424_v52 = vsub.f32 %v420_v45, %v412_v31  ;;  %v405_v56 = vmul.f32 %v968_v49, %v387_v53  ;;  %v510_v44 = vperm.slane %v508_v5, 0 }
  0xb9   : > { %v410_v55 = vmul.f32 %v406_v50, %v406_v50  ;;  %v459_v6 = vsel %vm458_vm2, %v454_v60, 0.0  ;;  %v483_v16 = vsel %vm458_vm2, %v479_v61, 0.0  ;;  %v536_v61 = vpop.permute.xlu0 %535 }
  0xba   : > { %v429_v57 = vmul.f32 %v972_v14, %v424_v52  ;;  %v409_v59 = vmul.f32 %v405_v56, %v405_v56  ;;  %v538_v5 = vperm.slane %v536_v61, 0 }
  0xbb   : > { %v414_v58 = vmul.f32 %v410_v55, %v406_v50 }
  0xbc   : > { %v433_v62 = vmul.f32 %v429_v57, %v373_v12  ;;  %v413_v0 = vmul.f32 %v409_v59, %v405_v56  ;;  %v514_v59 = vpop.permute.xlu1 %513 }
  0xbd   : > { %v418_v63 = vmul.f32 %v414_v58, %v414_v58  ;;  %v531_v36 = vpop.permute.xlu2 %530 }
  0xbe   : > { %v451_v1 = vsel %vm445_vm1, 0.0, %v433_v62  ;;  %v417_v4 = vmul.f32 %v413_v0, %v413_v0  ;;  %v533_v21 = vperm.slane %v531_v36, 0 }
  0xbf   : > { %v455_v2 = vmul.f32 %v451_v1, %v944_v26  ;;  %v480_v49 = vmul.f32 %v451_v1, %v938_v20  ;;  %v422_v3 = vmul.f32 2.0, %v418_v63  ;;  %v516_v1 = vperm.slane %v514_v59, 0 }
  0xc0   : > { %v421_v10 = vmul.f32 2.0, %v417_v4 }
  0xc1   : > { %v460_v11 = vsel %vm458_vm2, %v455_v2, 0.0  ;;  %v484_v7 = vsel %vm458_vm2, %v480_v49, 0.0  ;;  %v426_v9 = vsub.f32 %v422_v3, %v414_v58 }
  0xc2   : > { %v461_v12 = vadd.f32 %v460_v11, %v459_v6  ;;  %v485_v13 = vadd.f32 %v484_v7, %v483_v16  ;;  %v425_v26 = vsub.f32 %v421_v10, %v413_v0 }
  0xc3   : > { %v431_v15 = vmul.f32 %v972_v14, %v426_v9 }
  0xc4   : > { %v462_v17 = vrot.slane %v461_v12, 4  ;;  %v486_v20 = vrot.slane %v485_v13, 4  ;;  %v430_v19 = vmul.f32 %v972_v14, %v425_v26 }
  0xc5   : > { %v435_v18 = vmul.f32 %v431_v15, %v401_v46 }
  0xc6   : > { %v463_v22 = vadd.f32 %v462_v17, %v461_v12  ;;  %v487_v23 = vadd.f32 %v486_v20, %v485_v13  ;;  %v434_v27 = vmul.f32 %v430_v19, %v387_v53 }
  0xc7   : > { %v453_v25 = vsel %vm445_vm1, 0.0, %v435_v18 }
  0xc8   : > { %v457_v28 = vmul.f32 %v453_v25, %v952_v35  ;;  %v482_v29 = vmul.f32 %v453_v25, %v954_v40  ;;  %v464_v31 = vrot.slane %v463_v22, 2  ;;  %v488_v32 = vrot.slane %v487_v23, 2 }
  0xc9   : > { %v452_v33 = vsel %vm444_vm14, 0.0, %v434_v27 }
  0xca   : > { %v469_v37 = vsel %vm458_vm2, %v457_v28, 0.0  ;;  %v493_v14 = vsel %vm458_vm2, %v482_v29, 0.0  ;;  %v456_v38 = vmul.f32 %v452_v33, %v950_v34  ;;  %v481_v39 = vmul.f32 %v452_v33, %v956_v41 }
  0xcb   : > { %v465_v42 = vadd.f32 %v464_v31, %v463_v22  ;;  %v489_v35 = vadd.f32 %v488_v32, %v487_v23 }
  0xcc   : > { %v468_v40 = vsel %vm458_vm2, %v456_v38, 0.0  ;;  %v492_v43 = vsel %vm458_vm2, %v481_v39, 0.0 }
  0xcd   : > { %v470_v30 = vadd.f32 %v469_v37, %v468_v40  ;;  %v494_v45 = vadd.f32 %v493_v14, %v492_v43  ;;  %v466_v46 = vrot.slane %v465_v42, 1  ;;  %v490_v47 = vrot.slane %v489_v35, 1 }
  0xcf   : > { %v471_v48 = vrot.slane %v470_v30, 4  ;;  %v495_v50 = vrot.slane %v494_v45, 4  ;;  %v467_v51 = vadd.f32 %v466_v46, %v465_v42  ;;  %v491_v34 = vadd.f32 %v490_v47, %v489_v35 }
  0xd1   : > { %v496_v52 = vadd.f32 %v495_v50, %v494_v45  ;;  %v517_v41 = vadd.f32 %v510_v44, %v467_v51  ;;  %v539_v53 = vadd.f32 %v533_v21, %v491_v34  ;;  %v472_v54 = vadd.f32 %v471_v48, %v470_v30 }
  0xd3   : > { %v497_v55 = vrot.slane %v496_v52, 2  ;;  %v519_v56 = vmul.f32 0.1, %v517_v41  ;;  %v541_v57 = vmul.f32 0.1, %v539_v53  ;;  %v473_v58 = vrot.slane %v472_v54, 2 }
  0xd5   : > { %v498_v60 = vadd.f32 %v497_v55, %v496_v52  ;;  %v523_v62 = vrot.slane %v519_v56, 6  ;;  %v545_v63 = vrot.slane %v541_v57, 5  ;;  %v474_v0 = vadd.f32 %v473_v58, %v472_v54 }
  0xd7   : > { %v499_v2 = vrot.slane %v498_v60, 1  ;;  %v527_v49 = vadd.f32 %v523_v62, %v926_v8  ;;  %v549_v3 = vadd.f32 %v545_v63, %v926_v8  ;;  %v475_v4 = vrot.slane %v474_v0, 1 }
  0xd9   : > { %v500_v6 = vadd.f32 %v499_v2, %v498_v60  ;;  %v551_v16 = vmul.f32 0.1, %v527_v49  ;;  %578 = vst.msk [vmem:[%s1020_s7] sm:$0x4] %vm577_vm4, %v527_v49  ;;  %v561_v11 = vmul.f32 0.1, %v549_v3  ;;  %v476_v7 = vadd.f32 %v475_v4, %v474_v0 }
  0xda   : > { %581 = vst.msk [vmem:[%s1020_s7] sm:$0x8] %vm580_vm3, %v549_v3 }
  0xdb   : > { %v540_v9 = vadd.f32 %v538_v5, %v500_v6  ;;  %v555_v10 = vrot.slane %v551_v16, 2  ;;  %v565_v12 = vrot.slane %v561_v11, 2  ;;  %v518_v13 = vadd.f32 %v516_v1, %v476_v7 }
  0xdd   : > { %v542_v15 = vmul.f32 0.1, %v540_v9  ;;  %v559_v26 = vadd.f32 %v555_v10, %v926_v8  ;;  %v569_v17 = vadd.f32 %v565_v12, %v926_v8  ;;  %v520_v20 = vmul.f32 0.1, %v518_v13 }
  0xdf   : > { %v546_v18 = vrot.slane %v542_v15, 5  ;;  %572 = vst.msk [vmem:[%s1020_s7] sm:$0x1] %vm571_vm6, %v559_v26  ;;  %v524_v19 = vrot.slane %v520_v20, 6 }
  0xe0   : > { %575 = vst.msk [vmem:[%s1020_s7] sm:$0x2] %vm574_vm5, %v569_v17 }
  0xe1   : > { %v550_v22 = vadd.f32 %v546_v18, %v940_v24  ;;  %v528_v23 = vadd.f32 %v524_v19, %v940_v24 }
  0xe3   : > { %v562_v8 = vmul.f32 0.1, %v550_v22  ;;  %582 = vst.msk [vmem:[%s1020_s7 + $0x4] sm:$0x8] %vm580_vm3, %v550_v22  ;;  %v552_v25 = vmul.f32 0.1, %v528_v23 }
  0xe4   : > { %579 = vst.msk [vmem:[%s1020_s7 + $0x4] sm:$0x4] %vm577_vm4, %v528_v23 }
  0xe5   : > { %v566_v27 = vrot.slane %v562_v8, 2  ;;  %v556_v28 = vrot.slane %v552_v25, 2 }
  0xe7   : > { %v570_v29 = vadd.f32 %v566_v27, %v940_v24  ;;  %v560_v31 = vadd.f32 %v556_v28, %v940_v24 }
  0xe9   : > { %576 = vst.msk [vmem:[%s1020_s7 + $0x4] sm:$0x2] %vm574_vm5, %v570_v29 }
  0xea   : > { %573 = vst.msk [vmem:[%s1020_s7 + $0x4] sm:$0x1] %vm571_vm6, %v560_v31 }
  0xeb   : > { %786 = shalt.err (!%p783_p3)
}
  0xec   : > { %s825_s21 = smov 64   ;;  %s826_s1 = smov 4  }
  0xed   : > { %700 = dma.vmem_to_hbm [thread:$0]  (%p901_p5), %s597_s0, 128, %s599_s12, %s584_s13, %s825_s21, %s825_s21, %s826_s1  }
  0xee PF: > { %p706_p4 = scmp.ge.s32.totalorder %s821_s25, 2  ;;  %s613_s27 = sand.u32 1, %s809_s22  }
  0xef   : > { %s614_s28 = scalar_lea.sflag [#allocation5], %s613_s27 }
  0xf0   : > { %p703_p7 = pnand %p706_p4, %p905_p6 }
  0xf2   : > { %p704_p8 = pneg %p703_p7 }
  0xf4   : > { %804 = dma.done.wait (%p704_p8), %s614_s28, 128  }
  0xf5   : > { %806 = vsyncadd (%p704_p8), %s614_s28, 4294967168  ;;  %p17_p9 = scmp.ge.s32.totalorder %s888_s26, 6   ;;  %s1086_s22 = smov %s813_s23 }
  0xf6   : > { %s1087_s23 = smov %s817_s24  ;;  %s1088_s24 = smov %s899_s29 }
  0xf7   : > { %s1089_s25 = smov %s888_s26  ;;  %19 = sbr.rel (!%p17_p9) target bundleno = 6 (0x6), region = 81 }
  0xfc   :  { %620 = vsyncpa [#allocation5], 1 }
  0xfd   :  { %622 = vsyncpa [#allocation5 + $0x1], 1 }

</bundles_post_ra>
